<compile_context>
chip_gen: v7x
topology: tpu7x:2x2x1
jax: 0.10.0
libtpu: 0.0.40
codegen_flags: <defaults>
</compile_context>

<pallas_src>
import jax
import jax.numpy as jnp
from jax.experimental import pallas as pl
from jax.experimental.pallas import tpu as pltpu

EPS = 1e-5


def mlp_bn_kernel(x_ref, params_ref, b2_ref, o_ref):
    # params rows: 0 = W1 row, 1 = b1, 2 = gamma, 3 = beta, 4 = W2 column (as row)
    p = params_ref[...]                       # (5, H) -- single VMEM tile, one DMA
    w1r = p[0:1, :]
    b1r = p[1:2, :]
    gmr = p[2:3, :]
    btr = p[3:4, :]
    w2r = p[4:5, :]

    # hidden = x @ W1 + b1 with F_IN == 1: pure outer product -> VPU only
    # (deliberately NOT an MXU matmul: K=1 would waste the systolic array).
    h = x_ref[...] * w1r + b1r                # (B, H)

    # BatchNorm1d (training-mode batch stats), folded to a single FMA:
    #   a = relu((h - mean) * (gamma * rsqrt(var + eps)) + beta)
    mean = jnp.mean(h, axis=0, keepdims=True)         # (1, H)
    d = h - mean                                      # computed once, reused
    var = jnp.mean(d * d, axis=0, keepdims=True)      # (1, H) biased variance
    scale = gmr * jax.lax.rsqrt(var + EPS)            # (1, H)
    a = jnp.maximum(d * scale + btr, 0.0)             # (B, H)

    # predict = a @ W2 + b2 with O == 1: VPU multiply + XLU lane reduction
    # (deliberately NOT an MXU matmul: N=1 would waste the systolic array).
    o_ref[...] = jnp.sum(a * w2r, axis=1, keepdims=True) + b2_ref[0, 0]   # (B, 1)


def pack_params(w1, b1, gamma, beta, w2, b2):
    """Pack all per-hidden-column parameters into one small VMEM tile.

    Called ONCE (at parameter creation / update time), NOT per forward call,
    so the concat and its HBM write are off the inference critical path.
    """
    H = w1.shape[1]
    params = jnp.concatenate(
        [w1.reshape(1, H), b1.reshape(1, H), gamma.reshape(1, H),
         beta.reshape(1, H), w2.reshape(1, H)], axis=0).astype(jnp.float32)  # (5, H)
    b2_smem = jnp.asarray(b2, jnp.float32).reshape(1, 1)                      # scalar -> SMEM
    return params, b2_smem


@jax.jit
def net_forward(x, params, b2_smem):
    B, F_IN = x.shape
    H = params.shape[1]
    assert F_IN == 1, "kernel specialized for n_feature=1"
    assert params.shape[0] == 5, "params must be packed via pack_params"
    assert B >= 2, "training-mode BatchNorm1d needs batch size >= 2"

    full = lambda shape: pl.BlockSpec(shape, lambda: (0,) * len(shape))

    # Output is emitted directly in its logical (B, 1) shape: block == full
    # array dims (allowed), no padded slab, no post-kernel slice op.
    return pl.pallas_call(
        mlp_bn_kernel,
        out_shape=jax.ShapeDtypeStruct((B, 1), jnp.float32),
        grid=(),
        in_specs=[
            full(x.shape),                                       # x      (B, 1)  VMEM
            full(params.shape),                                  # params (5, H)  VMEM
            pl.BlockSpec(memory_space=pltpu.MemorySpace.SMEM),   # b2     (1, 1)  SMEM
        ],
        out_specs=full((B, 1)),
    )(x, params, b2_smem)


if __name__ == "__main__":
    # Small shapes consistent with the module's usage (x is (N, 1) in the
    # original script): batch=8, n_feature=1, n_hidden=32, n_output=1.
    B, F_IN, H, O = 8, 1, 32, 1

    key = jax.random.PRNGKey(0)
    kx, kw1, kb1, kw2, kb2 = jax.random.split(key, 5)

    x = jax.random.normal(kx, (B, F_IN), dtype=jnp.float32)

    # Deterministic parameter init (PyTorch-style uniform bounds by fan_in).
    bound1 = 1.0 / (F_IN ** 0.5)
    w1 = jax.random.uniform(kw1, (F_IN, H), jnp.float32, -bound1, bound1)
    b1 = jax.random.uniform(kb1, (1, H), jnp.float32, -bound1, bound1)

    gamma = jnp.ones((1, H), jnp.float32)   # BatchNorm1d default weight
    beta = jnp.zeros((1, H), jnp.float32)   # BatchNorm1d default bias

    bound2 = 1.0 / (H ** 0.5)
    w2 = jax.random.uniform(kw2, (H, O), jnp.float32, -bound2, bound2)
    b2 = jax.random.uniform(kb2, (1, O), jnp.float32, -bound2, bound2)

    # Pack once, outside the forward path.
    params, b2_smem = pack_params(w1, b1, gamma, beta, w2, b2)
    jax.block_until_ready((params, b2_smem))

    out = net_forward(x, params, b2_smem)
    jax.block_until_ready(out)

    # Pure-JAX reference (Linear -> training-mode BN -> ReLU -> Linear).
    h = x @ w1 + b1
    mu = h.mean(0, keepdims=True)
    var = ((h - mu) ** 2).mean(0, keepdims=True)
    ref = jnp.maximum((h - mu) / jnp.sqrt(var + EPS) * gamma + beta, 0.0) @ w2 + b2

    assert out.shape == (B, O), f"bad output shape {out.shape}"
    assert jnp.allclose(out, ref, atol=1e-5, rtol=1e-5), "mismatch vs reference"

    print("KERNEL_OK")
</pallas_src>

<mosaic_0001>
module attributes {stable_mosaic.version = 11 : i64} {
  func.func @mlp_bn_kernel(%arg0: memref<8x1xf32, #tpu.memory_space<vmem>>, %arg1: memref<5x32xf32, #tpu.memory_space<vmem>>, %arg2: memref<1x1xf32, #tpu.memory_space<smem>>, %arg3: memref<8x1xf32, #tpu.memory_space<vmem>>) attributes {dimension_semantics = [], scalar_prefetch = 0 : i64, scratch_operands = 0 : i64, tpu.core_type = #tpu.core_type<tc>} {
    %c0 = arith.constant 0 : index
    %c0_0 = arith.constant 0 : index
    %0 = vector.load %arg1[%c0, %c0_0] : memref<5x32xf32, #tpu.memory_space<vmem>>, vector<5x32xf32>
    %1 = vector.extract_strided_slice %0 {offsets = [0, 0], sizes = [1, 32], strides = [1, 1]} : vector<5x32xf32> to vector<1x32xf32>
    %2 = vector.extract_strided_slice %0 {offsets = [1, 0], sizes = [1, 32], strides = [1, 1]} : vector<5x32xf32> to vector<1x32xf32>
    %3 = vector.extract_strided_slice %0 {offsets = [2, 0], sizes = [1, 32], strides = [1, 1]} : vector<5x32xf32> to vector<1x32xf32>
    %4 = vector.extract_strided_slice %0 {offsets = [3, 0], sizes = [1, 32], strides = [1, 1]} : vector<5x32xf32> to vector<1x32xf32>
    %5 = vector.extract_strided_slice %0 {offsets = [4, 0], sizes = [1, 32], strides = [1, 1]} : vector<5x32xf32> to vector<1x32xf32>
    %c0_1 = arith.constant 0 : index
    %c0_2 = arith.constant 0 : index
    %6 = vector.load %arg0[%c0_1, %c0_2] : memref<8x1xf32, #tpu.memory_space<vmem>>, vector<8x1xf32>
    %7 = vector.broadcast %6 : vector<8x1xf32> to vector<8x32xf32>
    %8 = vector.broadcast %1 : vector<1x32xf32> to vector<8x32xf32>
    %9 = arith.mulf %7, %8 : vector<8x32xf32>
    %10 = vector.broadcast %2 : vector<1x32xf32> to vector<8x32xf32>
    %11 = arith.addf %9, %10 : vector<8x32xf32>
    %cst = arith.constant dense<0.000000e+00> : vector<32xf32>
    %12 = vector.multi_reduction <add>, %11, %cst [0] : vector<8x32xf32> to vector<32xf32>
    %13 = vector.shape_cast %12 : vector<32xf32> to vector<1x32xf32>
    %cst_3 = arith.constant 8.000000e+00 : f32
    %14 = vector.broadcast %cst_3 : f32 to vector<1x32xf32>
    %15 = arith.divf %13, %14 : vector<1x32xf32>
    %16 = vector.broadcast %15 : vector<1x32xf32> to vector<8x32xf32>
    %17 = arith.subf %11, %16 : vector<8x32xf32>
    %18 = arith.mulf %17, %17 : vector<8x32xf32>
    %cst_4 = arith.constant dense<0.000000e+00> : vector<32xf32>
    %19 = vector.multi_reduction <add>, %18, %cst_4 [0] : vector<8x32xf32> to vector<32xf32>
    %20 = vector.shape_cast %19 : vector<32xf32> to vector<1x32xf32>
    %cst_5 = arith.constant 8.000000e+00 : f32
    %21 = vector.broadcast %cst_5 : f32 to vector<1x32xf32>
    %22 = arith.divf %20, %21 : vector<1x32xf32>
    %cst_6 = arith.constant 9.99999974E-6 : f32
    %23 = vector.broadcast %cst_6 : f32 to vector<1x32xf32>
    %24 = arith.addf %22, %23 : vector<1x32xf32>
    %25 = math.rsqrt %24 : vector<1x32xf32>
    %26 = arith.mulf %3, %25 : vector<1x32xf32>
    %27 = vector.broadcast %26 : vector<1x32xf32> to vector<8x32xf32>
    %28 = arith.mulf %17, %27 : vector<8x32xf32>
    %29 = vector.broadcast %4 : vector<1x32xf32> to vector<8x32xf32>
    %30 = arith.addf %28, %29 : vector<8x32xf32>
    %cst_7 = arith.constant 0.000000e+00 : f32
    %31 = vector.broadcast %cst_7 : f32 to vector<8x32xf32>
    %32 = arith.maximumf %30, %31 : vector<8x32xf32>
    %33 = vector.broadcast %5 : vector<1x32xf32> to vector<8x32xf32>
    %34 = arith.mulf %32, %33 : vector<8x32xf32>
    %cst_8 = arith.constant dense<0.000000e+00> : vector<8xf32>
    %35 = vector.multi_reduction <add>, %34, %cst_8 [1] : vector<8x32xf32> to vector<8xf32>
    %36 = vector.shape_cast %35 : vector<8xf32> to vector<8x1xf32>
    %c0_9 = arith.constant 0 : index
    %c0_10 = arith.constant 0 : index
    %37 = memref.load %arg2[%c0_9, %c0_10] : memref<1x1xf32, #tpu.memory_space<smem>>
    %38 = vector.broadcast %37 : f32 to vector<8x1xf32>
    %39 = arith.addf %36, %38 : vector<8x1xf32>
    %c0_11 = arith.constant 0 : index
    %c0_12 = arith.constant 0 : index
    %40 = vector.load %arg3[%c0_11, %c0_12] : memref<8x1xf32, #tpu.memory_space<vmem>>, vector<8x1xf32>
    tpu.vector_store %arg3[%c0_11, %c0_12], %39 {strides = array<i32>} : memref<8x1xf32, #tpu.memory_space<vmem>>, vector<8x1xf32>,
    return
  }
}

</mosaic_0001>

<bundles_post_ra>
// kernel: net_forward.1
= control target key start
LH: loop header
LB: loop body
LE: loop exit
PB: predicated region body
PF: predicated region fallthrough
CT: control target
= control target key end

     0   :  { %v87_v0 = vmov 0   ;;  %v22_v2 = vlaneseq  ;;  %vm32_vm0 = vcmask 261120   ;;  %vm77_vm1 = vcmask 7168   ;;  %s123_s0 = inlined_call_operand.vmem [shape: f32[8,1], index: 0, kind: input, shape index: {}]   ;;  %s124_s1 = inlined_call_operand.vmem [shape: f32[5,32], index: 1, kind: input, shape index: {}]   ;;  %s125_s2 = inlined_call_operand.<no memory space> [shape: f32[1,1], index: 2, kind: input, shape index: {}]   ;;  %s126_s3 = inlined_call_operand.vmem [shape: f32[8,1], index: 3, kind: output, shape index: {}]  }
   0x1   :  { %84 = vset.pattern.permute.xlu0 %v87_v0  ;;  %v16_v1 = vld [vmem:[%s123_s0] sm:$0xff]  ;;  %v75_v44 = vstv %s125_s2 }
   0x2   :  { %19 = vperm.xlu0 %84, %v16_v1   ;;  %v23_v3 = vshrl.u32 %v22_v2, 7  ;;  %v15_v5 = vld [vmem:[%s124_s1] sm:$0x1f] }
   0x4   :  { %v24_v4 = vsub.s32 0, %v23_v3  ;;  %v29_v6 = vsub.s32 1, %v23_v3  ;;  %v57_v31 = vsub.s32 2, %v23_v3  ;;  %v62_v32 = vsub.s32 3, %v23_v3 }
   0x5   :  { %v68_v37 = vsub.s32 4, %v23_v3 }
   0x6   :  { %v25_v7 = vrot.slane %v15_v5, %v24_v4  ;;  %v30_v8 = vrot.slane %v15_v5, %v29_v6  ;;  %v63_v36 = vrot.slane %v15_v5, %v62_v32 }
   0x7   :  { %v69_v40 = vrot.slane %v15_v5, %v68_v37 }
  0x81   :  { %v20_v9 = vpop.permute.xlu0 %19 }
  0x82   :  { %v26_v10 = vmul.f32 %v25_v7, %v20_v9 }
  0x84   :  { %v31_v11 = vadd.f32 %v30_v8, %v26_v10 }
  0x86   :  { %v33_v12 = vsel %vm32_vm0, %v31_v11, 0.0 }
  0x87   :  { %v34_v13 = vrot.slane %v33_v12, 4 }
  0x89   :  { %v35_v14 = vadd.f32 %v34_v13, %v33_v12 }
  0x8b   :  { %v36_v15 = vrot.slane %v35_v14, 2 }
  0x8d   :  { %v37_v16 = vadd.f32 %v36_v15, %v35_v14 }
  0x8f   :  { %v38_v17 = vrot.slane %v37_v16, 1 }
  0x91   :  { %v39_v18 = vadd.f32 %v38_v17, %v37_v16 }
  0x93   :  { %v41_v19 = vmul.f32 0.125, %v39_v18 }
  0x95   :  { %v42_v20 = vsub.f32 %v31_v11, %v41_v19 }
  0x97   :  { %v43_v21 = vmul.f32 %v42_v20, %v42_v20 }
  0x99   :  { %v44_v22 = vsel %vm32_vm0, %v43_v21, 0.0 }
  0x9a   :  { %v45_v23 = vrot.slane %v44_v22, 4 }
  0x9c   :  { %v46_v24 = vadd.f32 %v45_v23, %v44_v22 }
  0x9e   :  { %v47_v25 = vrot.slane %v46_v24, 2 }
  0xa0   :  { %v48_v26 = vadd.f32 %v47_v25, %v46_v24 }
  0xa2   :  { %v49_v27 = vrot.slane %v48_v26, 1 }
  0xa4   :  { %v50_v28 = vadd.f32 %v49_v27, %v48_v26 }
  0xa6   :  { %v51_v29 = vmul.f32 0.125, %v50_v28 }
  0xa8   :  { %v52_v30 = vadd.f32 1e-05, %v51_v29 }
  0xaa   :  { %85 = vrsqrt.f32 %v52_v30 }
  0xb4   :  { %v86_v33 = vpop.eup %85 }
  0xb5   :  { %v54_v34 = vmul.f32 %v86_v33, %v15_v5 }
  0xb7   :  { %v58_v35 = vrot.slane %v54_v34, %v57_v31 }
  0xb9   :  { %v59_v38 = vmul.f32 %v58_v35, %v42_v20 }
  0xbb   :  { %v64_v39 = vadd.f32 %v63_v36, %v59_v38 }
  0xbd   :  { %v65_v41 = vmax.f32 %v64_v39, 0.0 }
  0xbf   :  { %v70_v42 = vmul.f32 %v69_v40, %v65_v41 }
  0xc1   :  { %v71_v43 = vsel %vm32_vm0, %v70_v42, 0.0 }
  0xc2   :  { %72 = vadd.xlane.f32.xlu0 %v71_v43 }
 0x14f   :  { %v73_v45 = vpop.xlane.xlu0 %72 }
 0x150   :  { %v76_v46 = vadd.f32 %v75_v44, %v73_v45 }
 0x152   :  { %78 = vst.msk [vmem:[%s126_s3] sm:$0xff] %vm77_vm1, %v76_v46 }

</bundles_post_ra>
